<compile_context>
chip_gen: v5e
topology: v5e:2x2
jax: 0.10.0
libtpu: 0.0.40
codegen_flags: <defaults>
</compile_context>

<pallas_src>
import functools

import jax
import jax.numpy as jnp
from jax.experimental import pallas as pl
from jax.experimental.pallas import tpu as pltpu


def _round_up(n, m):
    return -(-n // m) * m


def _vmem_capacity_bytes():
    try:
        info = pltpu.get_tpu_info()
        cap = getattr(info, "vmem_capacity_bytes", None)
        if cap:
            return int(cap)
    except Exception:
        pass
    return 128 * 1024 * 1024  # v5e/v6e default


def _pick_tile_nt(nt, vp, cin, kcout, cout, w, cd_bytes, out_bytes, budget):
    """Largest (n,t)-row tile whose estimated VMEM footprint fits `budget`."""

    def tile_bytes(t):
        x_buf = 2 * t * vp * _round_up(cin, 128) * cd_bytes            # pipelined input
        o_buf = 2 * t * cout * _round_up(w, 128) * out_bytes           # pipelined output (W-minor)
        z_buf = t * vp * _round_up(kcout, 128) * (4 + cd_bytes)        # f32 conv result + compute copy
        agg_buf = 2 * t * cout * _round_up(w, 128) * 4                 # live f32 partial sums
        fixed = 4 * 1024 * 1024                                        # weights / A / bias / headroom
        return x_buf + o_buf + z_buf + agg_buf + fixed

    cap = _round_up(min(nt, 1024), 8)
    for t in (1024, 768, 512, 384, 256, 192, 128, 96, 64, 48, 32, 24, 16, 8):
        if t <= cap and tile_bytes(t) <= budget:
            return t
    return 8


def _tgcn_kernel(x_ref, a_ref, w_ref, b_ref, o_ref):
    """One grid step = one tile of (n,t) rows, all K spatial partitions.

    x_ref: (tile_nt*Vp, Cin)   channels-last input rows (V zero-padded to Vp)
    a_ref: (K, Vp, W)          adjacency partitions (resident; constant index_map)
    w_ref: (Cin, K*Cout)       1x1-conv weights for ALL partitions (one operand)
    b_ref: (Cout, W)           bias folded through A (f32)
    o_ref: (tile_nt, Cout, W)  output tile
    """
    tile_nt, cout, _ = o_ref.shape
    num_k, vp, _ = a_ref.shape

    # (1) 1x1 conv for all K partitions: ONE large dense 2-D MXU matmul.
    #     contraction depth = Cin, output lanes = K*Cout.
    z = jax.lax.dot_general(
        x_ref[...], w_ref[...],
        dimension_numbers=(((1,), (0,)), ((), ())),
        preferred_element_type=jnp.float32)                 # (tile_nt*Vp, K*Cout) f32
    z = z.astype(x_ref.dtype)                               # narrow feed for step (2)
    z = z.reshape(tile_nt, vp, num_k * cout)                # layout-preserving (Vp % 8 == 0)

    # (2) spatial aggregation over graph nodes (small V-contraction), per partition.
    #     Start from the pre-folded bias so no zeros-init accumulator is needed.
    acc = b_ref[...].astype(jnp.float32)[None]              # (1, Cout, W), broadcasts over rows
    for k in range(num_k):                                  # K is tiny -> static unroll
        z_k = z[:, :, k * cout:(k + 1) * cout]              # (tile_nt, Vp, Cout)
        acc = acc + jax.lax.dot_general(
            z_k, a_ref[k],
            dimension_numbers=(((1,), (0,)), ((), ())),
            preferred_element_type=jnp.float32)             # (tile_nt, Cout, W)

    o_ref[...] = acc.astype(o_ref.dtype)


@functools.partial(jax.jit, static_argnames=("tile_nt", "compute_dtype"))
def conv_temporal_graphical(x, A, weight, bias, *, tile_nt=None,
                            compute_dtype=jnp.bfloat16):
    """x: (N, Cin, T, V); A: (K, V, V); weight: (K*Cout, Cin, 1, 1); bias: (K*Cout,)."""
    N, Cin, T, V = x.shape
    K, _, W = A.shape
    KCout = weight.shape[0]
    assert KCout % K == 0, "weight out-channels must be K * C_out"
    Cout = KCout // K

    NT = N * T
    Vp = _round_up(V, 8)                       # pad graph nodes to a sublane multiple
    cd_bytes = jnp.dtype(compute_dtype).itemsize
    out_bytes = jnp.dtype(x.dtype).itemsize

    # Generation-aware VMEM budget (v7x has 64 MiB/TC, v5e/v6e have 128 MiB).
    small_vmem = _vmem_capacity_bytes() <= 96 * 1024 * 1024
    budget = (20 if small_vmem else 44) * 1024 * 1024
    vmem_limit = (40 if small_vmem else 72) * 1024 * 1024

    auto_tile = tile_nt is None
    if auto_tile:
        tile_nt = _pick_tile_nt(NT, Vp, Cin, KCout, Cout, W, cd_bytes, out_bytes, budget)
        # Keep >= 2 grid steps when possible so a "parallel" axis can use both
        # v7x TensorCores (harmless elsewhere).
        if NT > 8 and pl.cdiv(NT, tile_nt) < 2:
            tile_nt = max(8, _round_up((NT + 1) // 2, 8))
    num_tiles = pl.cdiv(NT, tile_nt)

    # --- layout glue (fused by XLA into the one unavoidable transpose copy) ---
    # channels-last rows, t-major, V zero-padded to Vp:
    x_rows = jnp.transpose(x, (0, 2, 3, 1))                        # (N, T, V, Cin)
    if Vp != V:
        x_rows = jnp.pad(x_rows, ((0, 0), (0, 0), (0, Vp - V), (0, 0)))
    x_rows = x_rows.reshape(NT * Vp, Cin).astype(compute_dtype)    # (NT*Vp, Cin)

    w_all = weight[:, :, 0, 0].T.astype(compute_dtype)             # (Cin, K*Cout)
    a_p = A if Vp == V else jnp.pad(A, ((0, 0), (0, Vp - V), (0, 0)))
    a_p = a_p.astype(compute_dtype)                                # (K, Vp, W)
    bias_agg = jnp.einsum('kvw,kc->cw', A.astype(jnp.float32),
                          bias.reshape(K, Cout).astype(jnp.float32))  # (Cout, W) f32

    out_rows = pl.pallas_call(
        _tgcn_kernel,
        out_shape=jax.ShapeDtypeStruct((NT, Cout, W), x.dtype),
        grid_spec=pltpu.PrefetchScalarGridSpec(
            num_scalar_prefetch=0,
            grid=(num_tiles,),
            in_specs=[
                pl.BlockSpec((tile_nt * Vp, Cin), lambda i: (i, 0)),
                pl.BlockSpec((K, Vp, W), lambda i: (0, 0, 0)),
                pl.BlockSpec((Cin, KCout), lambda i: (0, 0)),
                pl.BlockSpec((Cout, W), lambda i: (0, 0)),
            ],
            out_specs=pl.BlockSpec((tile_nt, Cout, W), lambda i: (i, 0, 0)),
        ),
        compiler_params=pltpu.CompilerParams(
            dimension_semantics=("parallel",),
            vmem_limit_bytes=vmem_limit,
        ),
    )(x_rows, a_p, w_all, bias_agg)                                # (NT, Cout, W)

    # Back to the PyTorch output layout (N, Cout, T, W).
    out = out_rows.reshape(N, T, Cout, W).transpose(0, 2, 1, 3)
    return out, A


def _reference(x, A, weight, bias, K, Cout):
    # Pure-JAX reference of the PyTorch forward (t_kernel_size=1 => 1x1 conv).
    y = jnp.einsum('nctv,oc->notv', x, weight[:, :, 0, 0]) + bias[None, :, None, None]
    n, kc, t, v = y.shape
    y = y.reshape(n, K, Cout, t, v)
    return jnp.einsum('nkctv,kvw->nctw', y, A)


if __name__ == "__main__":
    # Small shapes consistent with the module.
    N, Cin, T, V = 2, 4, 8, 16
    K, Cout = 3, 8

    key = jax.random.PRNGKey(0)
    kx, ka, kw, kb = jax.random.split(key, 4)

    x = jax.random.normal(kx, (N, Cin, T, V), dtype=jnp.float32)
    A = jax.random.normal(ka, (K, V, V), dtype=jnp.float32)
    # Deterministic Conv2d-like parameter init (kernel (t_kernel_size=1, 1)).
    fan_in = Cin * 1 * 1
    bound = 1.0 / (fan_in ** 0.5)
    weight = jax.random.uniform(kw, (K * Cout, Cin, 1, 1),
                                dtype=jnp.float32, minval=-bound, maxval=bound)
    bias = jax.random.uniform(kb, (K * Cout,),
                              dtype=jnp.float32, minval=-bound, maxval=bound)

    ref = _reference(x, A, weight, bias, K, Cout)

    # Strict-precision path (f32 everywhere) -> tight tolerance vs f32 reference.
    out_f32, A_out = conv_temporal_graphical(x, A, weight, bias,
                                             compute_dtype=jnp.float32)
    out_f32 = jax.block_until_ready(out_f32)
    assert out_f32.shape == (N, Cout, T, V)
    assert jnp.allclose(out_f32, ref, atol=1e-4, rtol=1e-4), "f32 mismatch vs reference"
    assert jnp.array_equal(A_out, A)

    # Default bf16-on-MXU path (per perf review) -> looser tolerance vs f32 reference.
    out_bf16, _ = conv_temporal_graphical(x, A, weight, bias)
    out_bf16 = jax.block_until_ready(out_bf16)
    assert out_bf16.shape == (N, Cout, T, V)
    assert jnp.allclose(out_bf16, ref, atol=0.15, rtol=0.1), "bf16 mismatch vs reference"

    print("KERNEL_OK")
</pallas_src>

<mosaic_0001>
module attributes {stable_mosaic.version = 11 : i64} {
  func.func @_tgcn_kernel(%arg0: i32, %arg1: memref<128x4xf32, #tpu.memory_space<vmem>>, %arg2: memref<3x16x16xf32, #tpu.memory_space<vmem>>, %arg3: memref<4x24xf32, #tpu.memory_space<vmem>>, %arg4: memref<8x16xf32, #tpu.memory_space<vmem>>, %arg5: memref<8x8x16xf32, #tpu.memory_space<vmem>>) attributes {dimension_semantics = [#tpu.dimension_semantics<parallel>], iteration_bounds = array<i64: 2>, scalar_prefetch = 0 : i64, scratch_operands = 0 : i64, tpu.core_type = #tpu.core_type<tc>, window_params = [{transform_indices = @transform_0, window_bounds = array<i64: 128, 4>}, {pipeline_mode = #tpu.pipeline_mode<synchronous>, transform_indices = @transform_1, window_bounds = array<i64: 3, 16, 16>}, {pipeline_mode = #tpu.pipeline_mode<synchronous>, transform_indices = @transform_2, window_bounds = array<i64: 4, 24>}, {pipeline_mode = #tpu.pipeline_mode<synchronous>, transform_indices = @transform_3, window_bounds = array<i64: 8, 16>}, {transform_indices = @transform_4, window_bounds = array<i64: 8, 8, 16>}]} {
    %c0 = arith.constant 0 : index
    %c0_0 = arith.constant 0 : index
    %0 = vector.load %arg1[%c0, %c0_0] : memref<128x4xf32, #tpu.memory_space<vmem>>, vector<128x4xf32>
    %c0_1 = arith.constant 0 : index
    %c0_2 = arith.constant 0 : index
    %1 = vector.load %arg3[%c0_1, %c0_2] : memref<4x24xf32, #tpu.memory_space<vmem>>, vector<4x24xf32>
    %cst = arith.constant dense<0.000000e+00> : vector<128x24xf32>
    %2 = tpu.matmul %0, %1, %cst {dimension_numbers = #tpu.dot_dimension_numbers<[1], [0], [0], [1], [0, 0, 1, 1], [], []>} : vector<128x4xf32>, vector<4x24xf32>, vector<128x24xf32> -> vector<128x24xf32>
    %3 = vector.shape_cast %2 : vector<128x24xf32> to vector<8x16x24xf32>
    %c0_3 = arith.constant 0 : index
    %c0_4 = arith.constant 0 : index
    %4 = vector.load %arg4[%c0_3, %c0_4] : memref<8x16xf32, #tpu.memory_space<vmem>>, vector<8x16xf32>
    %5 = vector.shape_cast %4 : vector<8x16xf32> to vector<1x8x16xf32>
    %6 = vector.extract_strided_slice %3 {offsets = [0, 0, 0], sizes = [8, 16, 8], strides = [1, 1, 1]} : vector<8x16x24xf32> to vector<8x16x8xf32>
    %c0_5 = arith.constant 0 : index
    %c0_6 = arith.constant 0 : index
    %c0_7 = arith.constant 0 : index
    %7 = vector.load %arg2[%c0_5, %c0_6, %c0_7] : memref<3x16x16xf32, #tpu.memory_space<vmem>>, vector<1x16x16xf32>
    %8 = vector.shape_cast %7 : vector<1x16x16xf32> to vector<16x16xf32>
    %cst_8 = arith.constant dense<0.000000e+00> : vector<8x8x16xf32>
    %9 = tpu.matmul %6, %8, %cst_8 {dimension_numbers = #tpu.dot_dimension_numbers<[1], [0], [0, 2], [1], [0, 0, 0, 2, 1, 1], [], []>} : vector<8x16x8xf32>, vector<16x16xf32>, vector<8x8x16xf32> -> vector<8x8x16xf32>
    %10 = vector.broadcast %5 : vector<1x8x16xf32> to vector<8x8x16xf32>
    %11 = arith.addf %10, %9 : vector<8x8x16xf32>
    %12 = vector.extract_strided_slice %3 {offsets = [0, 0, 8], sizes = [8, 16, 8], strides = [1, 1, 1]} : vector<8x16x24xf32> to vector<8x16x8xf32>
    %c1 = arith.constant 1 : index
    %c0_9 = arith.constant 0 : index
    %c0_10 = arith.constant 0 : index
    %13 = vector.load %arg2[%c1, %c0_9, %c0_10] : memref<3x16x16xf32, #tpu.memory_space<vmem>>, vector<1x16x16xf32>
    %14 = vector.shape_cast %13 : vector<1x16x16xf32> to vector<16x16xf32>
    %cst_11 = arith.constant dense<0.000000e+00> : vector<8x8x16xf32>
    %15 = tpu.matmul %12, %14, %cst_11 {dimension_numbers = #tpu.dot_dimension_numbers<[1], [0], [0, 2], [1], [0, 0, 0, 2, 1, 1], [], []>} : vector<8x16x8xf32>, vector<16x16xf32>, vector<8x8x16xf32> -> vector<8x8x16xf32>
    %16 = arith.addf %11, %15 : vector<8x8x16xf32>
    %17 = vector.extract_strided_slice %3 {offsets = [0, 0, 16], sizes = [8, 16, 8], strides = [1, 1, 1]} : vector<8x16x24xf32> to vector<8x16x8xf32>
    %c2 = arith.constant 2 : index
    %c0_12 = arith.constant 0 : index
    %c0_13 = arith.constant 0 : index
    %18 = vector.load %arg2[%c2, %c0_12, %c0_13] : memref<3x16x16xf32, #tpu.memory_space<vmem>>, vector<1x16x16xf32>
    %19 = vector.shape_cast %18 : vector<1x16x16xf32> to vector<16x16xf32>
    %cst_14 = arith.constant dense<0.000000e+00> : vector<8x8x16xf32>
    %20 = tpu.matmul %17, %19, %cst_14 {dimension_numbers = #tpu.dot_dimension_numbers<[1], [0], [0, 2], [1], [0, 0, 0, 2, 1, 1], [], []>} : vector<8x16x8xf32>, vector<16x16xf32>, vector<8x8x16xf32> -> vector<8x8x16xf32>
    %21 = arith.addf %16, %20 : vector<8x8x16xf32>
    %c0_15 = arith.constant 0 : index
    %c0_16 = arith.constant 0 : index
    %c0_17 = arith.constant 0 : index
    %22 = vector.load %arg5[%c0_15, %c0_16, %c0_17] : memref<8x8x16xf32, #tpu.memory_space<vmem>>, vector<8x8x16xf32>
    tpu.vector_store %arg5[%c0_15, %c0_16, %c0_17], %21 {strides = array<i32>} : memref<8x8x16xf32, #tpu.memory_space<vmem>>, vector<8x8x16xf32>,
    return
  }
  func.func @transform_0(%arg0: i32) -> (i32, i32) {
    %c0_i32 = arith.constant 0 : i32
    %c0_i32_0 = arith.constant 0 : i32
    return %arg0, %c0_i32 : i32, i32
  }
  func.func @transform_1(%arg0: i32) -> (i32, i32, i32) {
    %c0_i32 = arith.constant 0 : i32
    %c0_i32_0 = arith.constant 0 : i32
    %c0_i32_1 = arith.constant 0 : i32
    %c0_i32_2 = arith.constant 0 : i32
    return %c0_i32, %c0_i32_0, %c0_i32_1 : i32, i32, i32
  }
  func.func @transform_2(%arg0: i32) -> (i32, i32) {
    %c0_i32 = arith.constant 0 : i32
    %c0_i32_0 = arith.constant 0 : i32
    %c0_i32_1 = arith.constant 0 : i32
    return %c0_i32, %c0_i32_0 : i32, i32
  }
  func.func @transform_3(%arg0: i32) -> (i32, i32) {
    %c0_i32 = arith.constant 0 : i32
    %c0_i32_0 = arith.constant 0 : i32
    %c0_i32_1 = arith.constant 0 : i32
    return %c0_i32, %c0_i32_0 : i32, i32
  }
  func.func @transform_4(%arg0: i32) -> (i32, i32, i32) {
    %c0_i32 = arith.constant 0 : i32
    %c0_i32_0 = arith.constant 0 : i32
    %c0_i32_1 = arith.constant 0 : i32
    return %arg0, %c0_i32, %c0_i32_0 : i32, i32, i32
  }
}

</mosaic_0001>

<bundles_post_ra>
// kernel: conv_temporal_graphical.1
= control target key start
LH: loop header
LB: loop body
LE: loop exit
PB: predicated region body
PF: predicated region fallthrough
CT: control target
= control target key end

     0   :  { %s1614_s15 = smov 0   ;;  %s1778_s0 = inlined_call_operand.vmem [shape: f32[256,4], index: 0, kind: input, shape index: {}]   ;;  %s1779_s1 = inlined_call_operand.vmem [shape: f32[3,16,16], index: 1, kind: input, shape index: {}]   ;;  %s1780_s2 = inlined_call_operand.vmem [shape: f32[4,24], index: 2, kind: input, shape index: {}]   ;;  %s1781_s3 = inlined_call_operand.vmem [shape: f32[8,16], index: 3, kind: input, shape index: {}]   ;;  %s1782_s4 = inlined_call_operand.vmem [shape: f32[16,8,16], index: 4, kind: output, shape index: {}]  }
   0x1 LB: > { %s1509_s16 = sadd.s32 4294967295, %s1585_s15   ;;  %p1513_p0 = scmp.ge.s32.totalorder %s1585_s15, 1  ;;  %s1585_s15 = sphi %s1614_s15, %s14_s15  }
   0x2   : > { %p163_p1 = scmp.lt.s32.totalorder %s1585_s15, 3 }
   0x4   : > { %p164_p2 = pnand %p1513_p0, %p163_p1 }
   0x5   : > { %s1514_s19 = sshll.u32 (!%p164_p2), %s1509_s16, 4  ;;  %s1587_s24 = smov (!%p164_p2), 120  }
   0x6   : > { %167 = sbr.rel (%p164_p2) target bundleno = 708 (0x2c4), region = 36  ;;  %p190_p3 = scmp.lt.s32.totalorder (!%p164_p2), %s1514_s19, 31 }
   0x7   : > { %s1588_s25 = smov (!%p164_p2), 112   ;;  %s1516_s12 = sshll.u32 (!%p164_p2), %s1509_s16, 3 }
   0x8   : > { %p196_p4 = scmp.lt.s32.totalorder (!%p164_p2), %s1516_s12, 15 }
   0xb   : > { %v217_v0 = vld [vmem:[%s1780_s2] sm:$0xf]  ;;  %vm267_vm0 = vcmask 1043456   ;;  %s1784_s19 = smov (!%p190_p3, %s1514_s19), 31  ;;  %vm218_vm1 = vcmask 31744   ;;  %v338_v61 = vld [vmem:[%s1779_s1 + $0x8] sm:$0xff] }
   0xc   : > { %1518 = vmatpush.msk.msra.mxu0 %vm267_vm0, %v217_v0  ;;  %1565 = vmatpush.msk.msra.mxu1 %vm267_vm0, %v217_v0  ;;  %s1515_s20 = sshll.u32 %s1784_s19, 3  ;;  %v337_v62 = vld [vmem:[%s1779_s1] sm:$0xff]  ;;  %vm595_vm2 = vcmask 130048   ;;  %s1786_s12 = smov (!%p196_p4, %s1516_s12), 15 }
   0xd   : > { %1566 = vmatpush.msk.msra.mxu2 %vm267_vm0, %v217_v0  ;;  %1567 = vmatpush.msk.msra.mxu3 %vm267_vm0, %v217_v0  ;;  %s1630_s23 = scalar_lea.vmem %s1778_s0, %s1515_s20  ;;  %s1517_s17 = sshll.u32 %s1786_s12, 3 }
   0xe   : > { %v201_v1 = vld [vmem:[%s1630_s23] sm:$0xff]  ;;  %v211_v2 = vld [vmem:[%s1630_s23 + $0x50] sm:$0xff]  ;;  %v202_v4 = vld [vmem:[%s1630_s23 + $0x8] sm:$0xff]  ;;  %634 = vmatpush.msrb.mxu1 %v338_v61  ;;  %s1757_s20 = scalar_lea.vmem %s1782_s4, %s1517_s17 }
   0xf   : > { %v213_v3 = vld [vmem:[%s1630_s23 + $0x60] sm:$0xff]  ;;  %1519 = vmatmul.msk.f32.vlgmr.msra.gmra.mxu0 %vm218_vm1, %v201_v1  ;;  %1529 = vmatmul.msk.f32.vlgmr.msra.gmra.mxu1 %vm218_vm1, %v211_v2  ;;  %v212_v5 = vld [vmem:[%s1630_s23 + $0x58] sm:$0xff]  ;;  %v203_v6 = vld [vmem:[%s1630_s23 + $0x10] sm:$0xff] }
  0x10   : > { %1531 = vmatmul.msk.f32.vlgmr.msra.gmra.mxu2 %vm218_vm1, %v213_v3  ;;  %v204_v7 = vld [vmem:[%s1630_s23 + $0x18] sm:$0xff]  ;;  %v205_v8 = vld [vmem:[%s1630_s23 + $0x20] sm:$0xff]  ;;  %v206_v9 = vld [vmem:[%s1630_s23 + $0x28] sm:$0xff]  ;;  %635 = vmatpush.msrb.mxu1 %v337_v62 }
  0x11   : > { %v214_v10 = vld [vmem:[%s1630_s23 + $0x68] sm:$0xff]  ;;  %v215_v11 = vld [vmem:[%s1630_s23 + $0x70] sm:$0xff]  ;;  %v216_v13 = vld [vmem:[%s1630_s23 + $0x78] sm:$0xff] }
  0x12   : > { %1533 = vmatmul.msk.f32.vlgmr.msra.gmra.mxu3 %vm218_vm1, %v215_v11  ;;  %v207_v12 = vld [vmem:[%s1630_s23 + $0x30] sm:$0xff]  ;;  %v208_v14 = vld [vmem:[%s1630_s23 + $0x38] sm:$0xff]  ;;  %v209_v15 = vld [vmem:[%s1630_s23 + $0x40] sm:$0xff] }
  0x13   : > { %v210_v16 = vld [vmem:[%s1630_s23 + $0x48] sm:$0xff] }
  0x17   : > { %1520 = vmatmul.msk.f32.gmra.mxu0 %vm218_vm1, %v202_v4  ;;  %1530 = vmatmul.msk.f32.gmra.mxu1 %vm218_vm1, %v212_v5  ;;  %v1544_v4 = vld [vmem:[%s1779_s1 + $0x18] sm:$0xff] }
  0x18   : > { %1532 = vmatmul.msk.f32.gmra.mxu2 %vm218_vm1, %v214_v10 }
  0x19   : > { %1030 = vmatpush.msrb.mxu2 %v1544_v4 }
  0x1a   : > { %1534 = vmatmul.msk.f32.gmra.mxu3 %vm218_vm1, %v216_v13 }
  0x1f   : > { %1521 = vmatmul.msk.f32.gmra.mxu0 %vm218_vm1, %v203_v6  ;;  %v1543_v6 = vld [vmem:[%s1779_s1 + $0x10] sm:$0xff] }
  0x20   : > { %1031 = vmatpush.msrb.mxu2 %v1543_v6 }
  0x27   : > { %1522 = vmatmul.msk.f32.gmra.mxu0 %vm218_vm1, %v204_v7  ;;  %v1554_v7 = vld [vmem:[%s1779_s1 + $0x28] sm:$0xff] }
  0x28   : > { %1410 = vmatpush.msrb.mxu3 %v1554_v7 }
  0x2f   : > { %1523 = vmatmul.msk.f32.gmra.mxu0 %vm218_vm1, %v205_v8  ;;  %v1553_v8 = vld [vmem:[%s1779_s1 + $0x20] sm:$0xff] }
  0x30   : > { %1411 = vmatpush.msrb.mxu3 %v1553_v8 }
  0x37   : > { %1524 = vmatmul.msk.f32.gmra.mxu0 %vm218_vm1, %v206_v9 }
  0x3f   : > { %1525 = vmatmul.msk.f32.gmra.mxu0 %vm218_vm1, %v207_v12 }
  0x47   : > { %1526 = vmatmul.msk.f32.gmra.mxu0 %vm218_vm1, %v208_v14 }
  0x4f   : > { %1527 = vmatmul.msk.f32.gmra.mxu0 %vm218_vm1, %v209_v15 }
  0x57   : > { %1528 = vmatmul.msk.f32.gmra.mxu0 %vm218_vm1, %v210_v16 }
  0x8c   : > { %v288_v17 = vpop.f32.mrf.mxu0  ;;  %v1664_v18 = vpop.f32.mrf.mxu1 }
  0x8d   : > { %708 = vrot.lane.b32.xlu1 %v1664_v18, %s1587_s24  ;;  %1068 = vrot.lane.b32.xlu0 %v288_v17, %s1588_s25 }
  0x8e   : > { %688 = vrot.lane.b32.xlu2 %v288_v17, %s1587_s24 }
  0x93   : > { %v324_v19 = vpop.f32.mrf.mxu2 }
  0x94   : > { %v291_v20 = vpop.f32.mrf.mxu0  ;;  %v321_v22 = vpop.f32.mrf.mxu1 }
  0x95   : > { %712 = vrot.lane.b32.xlu1 %v324_v19, %s1587_s24  ;;  %v330_v31 = vpop.f32.mrf.mxu3 }
  0x96   : > { %1088 = vrot.lane.b32.xlu2 %v1664_v18, %s1588_s25 }
  0x9b   : > { %v327_v30 = vpop.f32.mrf.mxu2 }
  0x9c   : > { %v294_v21 = vpop.f32.mrf.mxu0 }
  0x9d   : > { %690 = vrot.lane.b32.xlu1 %v291_v20, %s1587_s24  ;;  %v333_v32 = vpop.f32.mrf.mxu3 }
  0x9e   : > { %1070 = vrot.lane.b32.xlu2 %v291_v20, %s1588_s25 }
  0xa4   : > { %v297_v23 = vpop.f32.mrf.mxu0 }
  0xa5   : > { %710 = vrot.lane.b32.xlu1 %v321_v22, %s1587_s24 }
  0xa6   : > { %1072 = vrot.lane.b32.xlu2 %v294_v21, %s1588_s25 }
  0xac   : > { %v300_v24 = vpop.f32.mrf.mxu0 }
  0xad   : > { %1090 = vrot.lane.b32.xlu1 %v321_v22, %s1588_s25  ;;  %1076 = vrot.lane.b32.xlu0 %v300_v24, %s1588_s25 }
  0xae   : > { %1074 = vrot.lane.b32.xlu2 %v297_v23, %s1588_s25 }
  0xb4   : > { %v303_v25 = vpop.f32.mrf.mxu0 }
  0xb5   : > { %692 = vrot.lane.b32.xlu1 %v294_v21, %s1587_s24 }
  0xb6   : > { %698 = vrot.lane.b32.xlu2 %v303_v25, %s1587_s24 }
  0xbc   : > { %v306_v26 = vpop.f32.mrf.mxu0 }
  0xbd   : > { %694 = vrot.lane.b32.xlu1 %v297_v23, %s1587_s24  ;;  %700 = vrot.lane.b32.xlu0 %v306_v26, %s1587_s24 }
  0xbe   : > { %1080 = vrot.lane.b32.xlu2 %v306_v26, %s1588_s25 }
  0xc4   : > { %v309_v27 = vpop.f32.mrf.mxu0 }
  0xc5   : > { %696 = vrot.lane.b32.xlu1 %v300_v24, %s1587_s24  ;;  %1082 = vrot.lane.b32.xlu0 %v309_v27, %s1588_s25 }
  0xcc   : > { %v312_v28 = vpop.f32.mrf.mxu0 }
  0xcd   : > { %1078 = vrot.lane.b32.xlu1 %v303_v25, %s1588_s25  ;;  %704 = vrot.lane.b32.xlu2 %v312_v28, %s1587_s24 }
  0xd4   : > { %v315_v29 = vpop.f32.mrf.mxu0 }
  0xd5   : > { %702 = vrot.lane.b32.xlu1 %v309_v27, %s1587_s24  ;;  %1086 = vrot.lane.b32.xlu2 %v315_v29, %s1588_s25 }
  0xd6   : > { %706 = vrot.lane.b32.xlu0 %v315_v29, %s1587_s24 }
  0xdd   : > { %1084 = vrot.lane.b32.xlu1 %v312_v28, %s1588_s25  ;;  %714 = vrot.lane.b32.xlu2 %v327_v30, %s1587_s24 }
  0xde   : > { %1092 = vrot.lane.b32.xlu0 %v324_v19, %s1588_s25 }
  0xe5   : > { %1094 = vrot.lane.b32.xlu1 %v327_v30, %s1588_s25  ;;  %1096 = vrot.lane.b32.xlu2 %v330_v31, %s1588_s25 }
  0xe6   : > { %716 = vrot.lane.b32.xlu0 %v330_v31, %s1587_s24 }
  0xe8   : > { %v689_v35 = vpop.permute.xlu2 %688 }
  0xed   : > { %1098 = vrot.lane.b32.xlu1 %v333_v32, %s1588_s25  ;;  %718 = vrot.lane.b32.xlu2 %v333_v32, %s1587_s24 }
  0xf0   : > { %v1089_v37 = vpop.permute.xlu2 %1088 }
  0xf8   : > { %v1071_v40 = vpop.permute.xlu2 %1070 }
  0xff   : > { %v1700_v33 = vpop.permute.xlu1 %708  ;;  %v1069_v44 = vpop.permute.xlu0 %1068 }
 0x100   : > { %v1073_v42 = vpop.permute.xlu2 %1072 }
 0x107   : > { %v1702_v34 = vpop.permute.xlu1 %712 }
 0x108   : > { %339 = vxpose.xlu0.b32.start [1/2] (short) (narrow) %v288_v17, 8  ;;  %v1075_v45 = vpop.permute.xlu2 %1074 }
 0x10f   : > { %v691_v36 = vpop.permute.xlu1 %690 }
 0x110   : > { %340 = vxpose.xlu0.b32.end [2/2] (short) (narrow) %v291_v20, 8  ;;  %v699_v47 = vpop.permute.xlu2 %698 }
 0x113   : > { %403 = vxpose.xlu2.b32.start [1/2] (short) (narrow) %v300_v24, 8 }
 0x117   : > { %v711_v38 = vpop.permute.xlu1 %710 }
 0x118   : > { %435 = vxpose.xlu0.b32.start [1/2] (short) (narrow) %v306_v26, 8  ;;  %v1081_v50 = vpop.permute.xlu2 %1080 }
 0x11b   : > { %404 = vxpose.xlu2.b32.end [2/2] (short) (narrow) %v303_v25, 8 }
 0x11f   : > { %v1091_v39 = vpop.permute.xlu1 %1090  ;;  %v1077_v49 = vpop.permute.xlu0 %1076 }
 0x120   : > { %436 = vxpose.xlu0.b32.end [2/2] (short) (narrow) %v309_v27, 8 }
 0x122   : > { %371 = vxpose.xlu1.b32.start [1/2] (short) (narrow) %v294_v21, 8 }
 0x123   : > { %499 = vxpose.xlu2.b32.start [1/2] (short) (narrow) %v1664_v18, 8 }
 0x127   : > { %v693_v41 = vpop.permute.xlu1 %692  ;;  %v705_v52 = vpop.permute.xlu2 %704 }
 0x128   : > { %531 = vxpose.xlu0.b32.start [1/2] (short) (narrow) %v324_v19, 8 }
 0x12a   : > { %372 = vxpose.xlu1.b32.end [2/2] (short) (narrow) %v297_v23, 8 }
 0x12b   : > { %500 = vxpose.xlu2.b32.end [2/2] (short) (narrow) %v321_v22, 8 }
 0x12f   : > { %v695_v43 = vpop.permute.xlu1 %694  ;;  %v701_v54 = vpop.permute.xlu0 %700 }
 0x130   : > { %532 = vxpose.xlu0.b32.end [2/2] (short) (narrow) %v327_v30, 8  ;;  %v1087_v55 = vpop.permute.xlu2 %1086 }
 0x132   : > { %467 = vxpose.xlu1.b32.start [1/2] (short) (narrow) %v312_v28, 8 }
 0x133   : > { %1116 = vxpose.xlu2.b32.start [1/2] (short) (narrow) %v1069_v44, 8 }
 0x137   : > { %v697_v46 = vpop.permute.xlu1 %696  ;;  %v1083_v56 = vpop.permute.xlu0 %1082 }
 0x138   : > { %736 = vxpose.xlu0.b32.start [1/2] (short) (narrow) %v689_v35, 8  ;;  %v715_v59 = vpop.permute.xlu2 %714 }
 0x13a   : > { %468 = vxpose.xlu1.b32.end [2/2] (short) (narrow) %v315_v29, 8 }
 0x13b   : > { %1117 = vxpose.xlu2.b32.end [2/2] (short) (narrow) %v1071_v40, 8 }
 0x13f   : > { %v1079_v48 = vpop.permute.xlu1 %1078 }
 0x140   : > { %737 = vxpose.xlu0.b32.end [2/2] (short) (narrow) %v691_v36, 8  ;;  %v1097_v63 = vpop.permute.xlu2 %1096 }
 0x142   : > { %563 = vxpose.xlu1.b32.start [1/2] (short) (narrow) %v330_v31, 8  ;;  %v336_v31 = vld [vmem:[%s1781_s3] sm:$0xff] }
 0x143   : > { %1180 = vxpose.xlu2.b32.start [1/2] (short) (narrow) %v1077_v49, 8 }
 0x147   : > { %v703_v51 = vpop.permute.xlu1 %702 }
 0x148   : > { %800 = vxpose.xlu0.b32.start [1/2] (short) (narrow) %v697_v46, 8  ;;  %v707_v57 = vpop.permute.xlu0 %706  ;;  %v719_v1 = vpop.permute.xlu2 %718 }
 0x14a   : > { %564 = vxpose.xlu1.b32.end [2/2] (short) (narrow) %v333_v32, 8 }
 0x14b   : > { %1181 = vxpose.xlu2.b32.end [2/2] (short) (narrow) %v1079_v48, 8 }
 0x14f   : > { %v1085_v53 = vpop.permute.xlu1 %1084 }
 0x150   : > { %801 = vxpose.xlu0.b32.end [2/2] (short) (narrow) %v699_v47, 8  ;;  %v1093_v58 = vpop.permute.xlu0 %1092 }
 0x152   : > { %768 = vxpose.xlu1.b32.start [1/2] (short) (narrow) %v693_v41, 8 }
 0x153   : > { %1244 = vxpose.xlu2.b32.start [1/2] (short) (narrow) %v1085_v53, 8 }
 0x157   : > { %v1095_v60 = vpop.permute.xlu1 %1094 }
 0x158   : > { %832 = vxpose.xlu0.b32.start [1/2] (short) (narrow) %v701_v54, 8  ;;  %v717_v0 = vpop.permute.xlu0 %716 }
 0x15a   : > { %769 = vxpose.xlu1.b32.end [2/2] (short) (narrow) %v695_v43, 8 }
 0x15b   : > { %1245 = vxpose.xlu2.b32.end [2/2] (short) (narrow) %v1087_v55, 8 }
 0x15f   : > { %v1099_v2 = vpop.permute.xlu1 %1098 }
 0x160   : > { %833 = vxpose.xlu0.b32.end [2/2] (short) (narrow) %v703_v51, 8 }
 0x162   : > { %1148 = vxpose.xlu1.b32.start [1/2] (short) (narrow) %v1073_v42, 8 }
 0x163   : > { %1276 = vxpose.xlu2.b32.start [1/2] (short) (narrow) %v1089_v37, 8 }
 0x168   : > { %864 = vxpose.xlu0.b32.start [1/2] (short) (narrow) %v705_v52, 8 }
 0x16a   : > { %1149 = vxpose.xlu1.b32.end [2/2] (short) (narrow) %v1075_v45, 8 }
 0x16b   : > { %1277 = vxpose.xlu2.b32.end [2/2] (short) (narrow) %v1091_v39, 8 }
 0x170   : > { %865 = vxpose.xlu0.b32.end [2/2] (short) (narrow) %v707_v57, 8 }
 0x172   : > { %1212 = vxpose.xlu1.b32.start [1/2] (short) (narrow) %v1081_v50, 8 }
 0x173   : > { %1308 = vxpose.xlu2.b32.start [1/2] (short) (narrow) %v1093_v58, 8 }
 0x178   : > { %896 = vxpose.xlu0.b32.start [1/2] (short) (narrow) %v1700_v33, 8 }
 0x17a   : > { %1213 = vxpose.xlu1.b32.end [2/2] (short) (narrow) %v1083_v56, 8 }
 0x17b   : > { %1309 = vxpose.xlu2.b32.end [2/2] (short) (narrow) %v1095_v60, 8 }
 0x180   : > { %897 = vxpose.xlu0.b32.end [2/2] (short) (narrow) %v711_v38, 8 }
 0x182   : > { %960 = vxpose.xlu1.b32.start [1/2] (short) (narrow) %v717_v0, 8 }
 0x188   : > { %928 = vxpose.xlu0.b32.start [1/2] (short) (narrow) %v1702_v34, 8 }
 0x18a   : > { %961 = vxpose.xlu1.b32.end [2/2] (short) (narrow) %v719_v1, 8 }
 0x190   : > { %929 = vxpose.xlu0.b32.end [2/2] (short) (narrow) %v715_v59, 8 }
 0x198   : > { %1340 = vxpose.xlu0.b32.start [1/2] (short) (narrow) %v1097_v63, 8 }
 0x1a0   : > { %1341 = vxpose.xlu0.b32.end [2/2] (short) (narrow) %v1099_v2, 8 }
 0x1ac   : > { %v355_v3 = vpop.trf.xlu0  ;;  %v419_v5 = vpop.trf.xlu2 }
 0x1ad   : > { %1535 = vmatmul.msk.f32.vlgmr.msrb.gmra.mxu1 %vm595_vm2, %v355_v3 }
 0x1bc   : > { %v515_v9 = vpop.trf.xlu2  ;;  %v451_v11 = vpop.trf.xlu0 }
 0x1c6   : > { %v387_v10 = vpop.trf.xlu1 }
 0x1c7   : > { %1536 = vmatmul.msk.f32.gmra.mxu1 %vm595_vm2, %v387_v10 }
 0x1cc   : > { %v1132_v12 = vpop.trf.xlu2  ;;  %v547_v13 = vpop.trf.xlu0 }
 0x1cd   : > { %1555 = vmatmul.msk.f32.vlgmr.msrb.gmra.mxu3 %vm595_vm2, %v1132_v12 }
 0x1cf   : > { %1537 = vmatmul.msk.f32.gmra.mxu1 %vm595_vm2, %v419_v5 }
 0x1d6   : > { %v483_v14 = vpop.trf.xlu1 }
 0x1d7   : > { %1538 = vmatmul.msk.f32.gmra.mxu1 %vm595_vm2, %v451_v11 }
 0x1dc   : > { %v752_v15 = vpop.trf.xlu0  ;;  %v1196_v21 = vpop.trf.xlu2 }
 0x1dd   : > { %1545 = vmatmul.msk.f32.vlgmr.msrb.gmra.mxu2 %vm595_vm2, %v752_v15 }
 0x1df   : > { %1539 = vmatmul.msk.f32.gmra.mxu1 %vm595_vm2, %v483_v14 }
 0x1e6   : > { %v579_v16 = vpop.trf.xlu1 }
 0x1e7   : > { %1540 = vmatmul.msk.f32.gmra.mxu1 %vm595_vm2, %v515_v9 }
 0x1ec   : > { %v816_v18 = vpop.trf.xlu0  ;;  %v1260_v24 = vpop.trf.xlu2 }
 0x1ef   : > { %1541 = vmatmul.msk.f32.gmra.mxu1 %vm595_vm2, %v547_v13 }
 0x1f6   : > { %v784_v17 = vpop.trf.xlu1 }
 0x1f7   : > { %1546 = vmatmul.msk.f32.gmra.mxu2 %vm595_vm2, %v784_v17  ;;  %1542 = vmatmul.msk.f32.gmra.mxu1 %vm595_vm2, %v579_v16 }
 0x1fc   : > { %v848_v19 = vpop.trf.xlu0  ;;  %v1292_v26 = vpop.trf.xlu2 }
 0x1ff   : > { %1547 = vmatmul.msk.f32.gmra.mxu2 %vm595_vm2, %v816_v18 }
 0x206   : > { %v1164_v20 = vpop.trf.xlu1 }
 0x207   : > { %1548 = vmatmul.msk.f32.gmra.mxu2 %vm595_vm2, %v848_v19  ;;  %1556 = vmatmul.msk.f32.gmra.mxu3 %vm595_vm2, %v1164_v20 }
 0x20c   : > { %v880_v22 = vpop.trf.xlu0  ;;  %v1324_v28 = vpop.trf.xlu2 }
 0x20f   : > { %1549 = vmatmul.msk.f32.gmra.mxu2 %vm595_vm2, %v880_v22  ;;  %1557 = vmatmul.msk.f32.gmra.mxu3 %vm595_vm2, %v1196_v21 }
 0x216   : > { %v1228_v23 = vpop.trf.xlu1 }
 0x217   : > { %1558 = vmatmul.msk.f32.gmra.mxu3 %vm595_vm2, %v1228_v23 }
 0x21c   : > { %v912_v25 = vpop.trf.xlu0 }
 0x21d   : > { %1550 = vmatmul.msk.f32.gmra.mxu2 %vm595_vm2, %v912_v25 }
 0x21f   : > { %1559 = vmatmul.msk.f32.gmra.mxu3 %vm595_vm2, %v1260_v24 }
 0x226   : > { %v976_v29 = vpop.trf.xlu1 }
 0x227   : > { %1560 = vmatmul.msk.f32.gmra.mxu3 %vm595_vm2, %v1292_v26 }
 0x22a   : > { %v637_v32 = vpop.f32.mrf.mxu1 }
 0x22b   : > { %v661_v33 = vadd.f32 %v637_v32, %v336_v31 }
 0x22c   : > { %v944_v27 = vpop.trf.xlu0 }
 0x22d   : > { %1551 = vmatmul.msk.f32.gmra.mxu2 %vm595_vm2, %v944_v27 }
 0x22f   : > { %1561 = vmatmul.msk.f32.gmra.mxu3 %vm595_vm2, %v1324_v28 }
 0x235   : > { %1552 = vmatmul.msk.f32.gmra.mxu2 %vm595_vm2, %v976_v29 }
 0x23c   : > { %v1356_v30 = vpop.trf.xlu0 }
 0x23d   : > { %1562 = vmatmul.msk.f32.gmra.mxu3 %vm595_vm2, %v1356_v30 }
 0x244   : > { %v640_v38 = vpop.f32.mrf.mxu1 }
 0x245   : > { %v662_v41 = vadd.f32 %v640_v38, %v336_v31 }
 0x24c   : > { %v643_v40 = vpop.f32.mrf.mxu1 }
 0x24d   : > { %v663_v46 = vadd.f32 %v643_v40, %v336_v31 }
 0x250   : > { %v1413_v35 = vpop.f32.mrf.mxu3 }
 0x254   : > { %v646_v47 = vpop.f32.mrf.mxu1 }
 0x255   : > { %v664_v52 = vadd.f32 %v646_v47, %v336_v31 }
 0x25c   : > { %v649_v54 = vpop.f32.mrf.mxu1 }
 0x25d   : > { %v665_v58 = vadd.f32 %v649_v54, %v336_v31 }
 0x260   : > { %v1033_v34 = vpop.f32.mrf.mxu2 }
 0x261   : > { %v1057_v36 = vadd.f32 %v1033_v34, %v661_v33 }
 0x263   : > { %v1437_v37 = vadd.f32 %v1413_v35, %v1057_v36 }
 0x264   : > { %v652_v62 = vpop.f32.mrf.mxu1 }
 0x265   : > { %1445 = vst.msk [vmem:[%s1757_s20] sm:$0xff] %vm595_vm2, %v1437_v37  ;;  %v666_v0 = vadd.f32 %v652_v62, %v336_v31 }
 0x26c   : > { %v655_v4 = vpop.f32.mrf.mxu1 }
 0x26d   : > { %v667_v5 = vadd.f32 %v655_v4, %v336_v31 }
 0x274   : > { %v658_v10 = vpop.f32.mrf.mxu1 }
 0x275   : > { %v668_v12 = vadd.f32 %v658_v10, %v336_v31 }
 0x27a   : > { %v1036_v39 = vpop.f32.mrf.mxu2 }
 0x27b   : > { %v1058_v42 = vadd.f32 %v1036_v39, %v662_v41 }
 0x282   : > { %v1039_v43 = vpop.f32.mrf.mxu2 }
 0x283   : > { %v1059_v48 = vadd.f32 %v1039_v43, %v663_v46 }
 0x28a   : > { %v1416_v44 = vpop.f32.mrf.mxu3  ;;  %v1042_v51 = vpop.f32.mrf.mxu2 }
 0x28b   : > { %v1438_v45 = vadd.f32 %v1416_v44, %v1058_v42  ;;  %v1060_v53 = vadd.f32 %v1042_v51, %v664_v52 }
 0x28d   : > { %1446 = vst.msk [vmem:[%s1757_s20 + $0x8] sm:$0xff] %vm595_vm2, %v1438_v45 }
 0x292   : > { %v1419_v49 = vpop.f32.mrf.mxu3  ;;  %v1045_v57 = vpop.f32.mrf.mxu2 }
 0x293   : > { %v1439_v50 = vadd.f32 %v1419_v49, %v1059_v48  ;;  %v1061_v59 = vadd.f32 %v1045_v57, %v665_v58 }
 0x295   : > { %1447 = vst.msk [vmem:[%s1757_s20 + $0x10] sm:$0xff] %vm595_vm2, %v1439_v50 }
 0x29a   : > { %v1422_v55 = vpop.f32.mrf.mxu3 }
 0x29b   : > { %v1440_v56 = vadd.f32 %v1422_v55, %v1060_v53 }
 0x29d   : > { %1448 = vst.msk [vmem:[%s1757_s20 + $0x18] sm:$0xff] %vm595_vm2, %v1440_v56 }
 0x2a0   : > { %v1048_v63 = vpop.f32.mrf.mxu2 }
 0x2a1   : > { %v1062_v1 = vadd.f32 %v1048_v63, %v666_v0 }
 0x2a2   : > { %v1425_v60 = vpop.f32.mrf.mxu3 }
 0x2a3   : > { %v1441_v61 = vadd.f32 %v1425_v60, %v1061_v59 }
 0x2a5   : > { %1449 = vst.msk [vmem:[%s1757_s20 + $0x20] sm:$0xff] %vm595_vm2, %v1441_v61 }
 0x2aa   : > { %v1428_v2 = vpop.f32.mrf.mxu3 }
 0x2ab   : > { %v1442_v3 = vadd.f32 %v1428_v2, %v1062_v1 }
 0x2ad   : > { %1450 = vst.msk [vmem:[%s1757_s20 + $0x28] sm:$0xff] %vm595_vm2, %v1442_v3 }
 0x2b0   : > { %v1051_v6 = vpop.f32.mrf.mxu2 }
 0x2b1   : > { %v1063_v7 = vadd.f32 %v1051_v6, %v667_v5 }
 0x2b2   : > { %v1431_v8 = vpop.f32.mrf.mxu3 }
 0x2b3   : > { %v1443_v9 = vadd.f32 %v1431_v8, %v1063_v7 }
 0x2b5   : > { %1451 = vst.msk [vmem:[%s1757_s20 + $0x30] sm:$0xff] %vm595_vm2, %v1443_v9 }
 0x2b8   : > { %v1054_v11 = vpop.f32.mrf.mxu2 }
 0x2b9   : > { %v1064_v13 = vadd.f32 %v1054_v11, %v668_v12 }
 0x2c0   : > { %v1434_v14 = vpop.f32.mrf.mxu3 }
 0x2c1   : > { %v1444_v15 = vadd.f32 %v1434_v14, %v1064_v13 }
 0x2c3   : > { %1452 = vst.msk [vmem:[%s1757_s20 + $0x38] sm:$0xff] %vm595_vm2, %v1444_v15 }
 0x2c4 PF: > { %s14_s15 = sadd.s32 1, %s1585_s15  }
 0x2c5   : > { %p11_p5 = scmp.ge.s32.totalorder %s14_s15, 4  }
 0x2c7   :  { %13 = sbr.rel (!%p11_p5) target bundleno = 1 (0x1), region = 68 }

</bundles_post_ra>
